<compile_context>
chip_gen: v7x
topology: tpu7x:2x2x1
jax: 0.10.0
libtpu: 0.0.40
codegen_flags: <defaults>
</compile_context>

<pallas_src>
import math
from dataclasses import dataclass

import jax
import jax.numpy as jnp
from jax.experimental import pallas as pl
from jax.experimental.pallas import tpu as pltpu


@dataclass
class RopeScaling:
  factor: float = 8.0
  low_freq_factor: float = 1.0
  high_freq_factor: float = 4.0
  original_context_len: int = 8192


def llama3_rope_frequencies(head_dim: int, theta: float,
                            scaling: RopeScaling | None = None) -> jnp.ndarray:
  """Deterministic inv_freq buffer, shape [head_dim // 2], float32."""
  inv_freq = 1.0 / (
      theta ** (jnp.arange(0, head_dim, 2, dtype=jnp.float32) / head_dim))
  if scaling is None:
    return inv_freq
  low_freq_wavelen = scaling.original_context_len / scaling.low_freq_factor
  high_freq_wavelen = scaling.original_context_len / scaling.high_freq_factor
  wavelen = 2.0 * math.pi / inv_freq
  inv_freq_llama = jnp.where(wavelen > low_freq_wavelen,
                             inv_freq / scaling.factor, inv_freq)
  smooth = ((scaling.original_context_len / wavelen - scaling.low_freq_factor)
            / (scaling.high_freq_factor - scaling.low_freq_factor))
  smoothed = (1.0 - smooth) / scaling.factor * inv_freq + smooth * inv_freq
  is_medium = (wavelen >= high_freq_wavelen) & (wavelen <= low_freq_wavelen)
  return jnp.where(is_medium, smoothed, inv_freq_llama)


def _rope_kernel(pos_ref, inv_ref, cos_ref, sin_ref):
  # pos_ref: (T, 1)  int32 -- token positions, sublane-major
  # inv_ref: (1, D)  f32   -- inverse frequencies, halves pre-duplicated
  # cos_ref/sin_ref: (T, D) in the requested output dtype (x.dtype)
  pos = pos_ref[...].astype(jnp.float32)     # (T, 1) f32 (single VALU convert)
  inv = inv_ref[...]                         # (1, D) f32
  freqs = pos * inv                          # (T, D) f32, free vreg broadcast
  cos_ref[...] = jnp.cos(freqs).astype(cos_ref.dtype)
  sin_ref[...] = jnp.sin(freqs).astype(sin_ref.dtype)


def llama4_rotary_embedding(x: jnp.ndarray,
                            position_ids: jnp.ndarray,
                            inv_freq: jnp.ndarray,
                            *,
                            tile_tokens: int | None = None):
  """Pallas equivalent of Llama4TextRotaryEmbedding.forward(x, position_ids).

  Returns (cos, sin), each [B, S, head_dim] in x.dtype.
  """
  B, S = position_ids.shape
  N = B * S
  Dh = inv_freq.shape[0]
  D = 2 * Dh
  out_dtype = x.dtype
  itemsize = jnp.dtype(out_dtype).itemsize

  # Positions stay integer; converted to f32 inside the kernel.
  pos2d = position_ids.reshape(N, 1)
  if pos2d.dtype != jnp.int32 and not jnp.issubdtype(pos2d.dtype, jnp.floating):
    pos2d = pos2d.astype(jnp.int32)

  # Full-width frequencies (emb = cat(freqs, freqs)) -- duplicated once here so
  # the kernel never concatenates / relayouts.
  inv_full = jnp.concatenate(
      [inv_freq.astype(jnp.float32), inv_freq.astype(jnp.float32)]
  ).reshape(1, D)

  # Token tile selection:
  #   * <=2-byte outputs: 8192 rows (double-buffered outputs ~8 MiB, fine on
  #     all generations); f32 outputs: 4096 rows (v5e's 16 MiB scoped VMEM).
  #   * multiple of 8 (sublane), and keep >= 2 grid steps when N allows so the
  #     parallel axis shards across v7x's two TensorCores.
  if tile_tokens is None:
    tile_tokens = 8192 if itemsize <= 2 else 4096
  tile_tokens = max(8, (tile_tokens // 8) * 8)

  if N > tile_tokens:
    T = tile_tokens
  elif N >= 16:
    T = ((pl.cdiv(N, 2) + 7) // 8) * 8      # two-ish steps, sublane-aligned
    T = min(T, N)
  else:
    T = N                                    # tiny shapes: single full block
  grid = (pl.cdiv(N, T),)

  cost = pl.CostEstimate(
      flops=N * D,                            # pos * inv_freq outer product
      transcendentals=2 * N * D,              # cos + sin
      bytes_accessed=N * 4 + D * 4 + 2 * N * D * itemsize,
  )

  cos2d, sin2d = pl.pallas_call(
      _rope_kernel,
      out_shape=(
          jax.ShapeDtypeStruct((N, D), out_dtype),
          jax.ShapeDtypeStruct((N, D), out_dtype),
      ),
      grid=grid,
      in_specs=[
          pl.BlockSpec((T, 1), lambda i: (i, 0)),
          pl.BlockSpec((1, D), lambda i: (0, 0)),
      ],
      out_specs=(
          pl.BlockSpec((T, D), lambda i: (i, 0)),
          pl.BlockSpec((T, D), lambda i: (i, 0)),
      ),
      compiler_params=pltpu.CompilerParams(
          dimension_semantics=("parallel",),
      ),
      cost_estimate=cost,
  )(pos2d, inv_full)

  return cos2d.reshape(B, S, D), sin2d.reshape(B, S, D)


if __name__ == "__main__":
  key = jax.random.PRNGKey(0)

  # Small shapes consistent with the module's forward:
  #   x:            [B, S, head_dim]  (only used for dtype)
  #   position_ids: [B, S]
  # head_dim=128 matches real Llama4 heads and keeps output stores lane-dense.
  B, S, head_dim = 2, 16, 128
  rope_theta = 500000.0

  x = jax.random.normal(key, (B, S, head_dim), dtype=jnp.float32).astype(
      jnp.bfloat16)
  # Distinct positions per batch row so tiling/indexing bugs would be caught.
  position_ids = jnp.arange(B * S, dtype=jnp.int32).reshape(B, S)

  # Deterministic "buffer" (module __init__); exercise the llama3 scaling path.
  inv_freq = llama3_rope_frequencies(head_dim, theta=rope_theta,
                                     scaling=RopeScaling())

  cos, sin = llama4_rotary_embedding(x, position_ids, inv_freq)
  jax.block_until_ready((cos, sin))

  # Pure-JAX reference of the PyTorch forward semantics.
  pos = position_ids.astype(jnp.float32)
  freqs_ref = pos[:, :, None] * inv_freq[None, None, :]
  emb_ref = jnp.concatenate([freqs_ref, freqs_ref], axis=-1)
  cos_ref = jnp.cos(emb_ref).astype(x.dtype)
  sin_ref = jnp.sin(emb_ref).astype(x.dtype)

  assert cos.shape == (B, S, head_dim) and sin.shape == (B, S, head_dim)
  assert cos.dtype == x.dtype and sin.dtype == x.dtype
  assert jnp.allclose(cos.astype(jnp.float32), cos_ref.astype(jnp.float32),
                      atol=1e-2, rtol=1e-2)
  assert jnp.allclose(sin.astype(jnp.float32), sin_ref.astype(jnp.float32),
                      atol=1e-2, rtol=1e-2)

  # Also run the scaling=None path and an f32-output path so both configs
  # (and the f32 tile cap) lower and execute.
  inv_freq_plain = llama3_rope_frequencies(head_dim, theta=rope_theta,
                                           scaling=None)
  cos2, sin2 = llama4_rotary_embedding(
      x.astype(jnp.float32), position_ids, inv_freq_plain)
  jax.block_until_ready((cos2, sin2))
  cos2_ref = jnp.cos(pos[:, :, None] * inv_freq_plain[None, None, :])
  assert jnp.allclose(cos2[..., :head_dim // 2], cos2_ref, atol=1e-5, rtol=1e-5)

  print("KERNEL_OK")
</pallas_src>

<mosaic_0001>
module attributes {stable_mosaic.version = 11 : i64} {
  func.func @_rope_kernel(%arg0: i32, %arg1: memref<16x1xi32, #tpu.memory_space<vmem>>, %arg2: memref<1x128xf32, #tpu.memory_space<vmem>>, %arg3: memref<16x128xbf16, #tpu.memory_space<vmem>>, %arg4: memref<16x128xbf16, #tpu.memory_space<vmem>>) attributes {dimension_semantics = [#tpu.dimension_semantics<parallel>], iteration_bounds = array<i64: 2>, scalar_prefetch = 0 : i64, scratch_operands = 0 : i64, tpu.core_type = #tpu.core_type<tc>, window_params = [{transform_indices = @transform_0, window_bounds = array<i64: 16, 1>}, {pipeline_mode = #tpu.pipeline_mode<synchronous>, transform_indices = @transform_1, window_bounds = array<i64: 1, 128>}, {transform_indices = @transform_2, window_bounds = array<i64: 16, 128>}, {transform_indices = @transform_3, window_bounds = array<i64: 16, 128>}]} {
    %c0 = arith.constant 0 : index
    %c0_0 = arith.constant 0 : index
    %0 = vector.load %arg1[%c0, %c0_0] : memref<16x1xi32, #tpu.memory_space<vmem>>, vector<16x1xi32>
    %1 = arith.sitofp %0 : vector<16x1xi32> to vector<16x1xf32>
    %c0_1 = arith.constant 0 : index
    %c0_2 = arith.constant 0 : index
    %2 = vector.load %arg2[%c0_1, %c0_2] : memref<1x128xf32, #tpu.memory_space<vmem>>, vector<1x128xf32>
    %3 = vector.broadcast %1 : vector<16x1xf32> to vector<16x128xf32>
    %4 = vector.broadcast %2 : vector<1x128xf32> to vector<16x128xf32>
    %5 = arith.mulf %3, %4 : vector<16x128xf32>
    %6 = math.cos %5 : vector<16x128xf32>
    %7 = arith.truncf %6 : vector<16x128xf32> to vector<16x128xbf16>
    %c0_3 = arith.constant 0 : index
    %c0_4 = arith.constant 0 : index
    %8 = vector.load %arg3[%c0_3, %c0_4] : memref<16x128xbf16, #tpu.memory_space<vmem>>, vector<16x128xbf16>
    tpu.vector_store %arg3[%c0_3, %c0_4], %7 {strides = array<i32>} : memref<16x128xbf16, #tpu.memory_space<vmem>>, vector<16x128xbf16>,
    %9 = math.sin %5 : vector<16x128xf32>
    %10 = arith.truncf %9 : vector<16x128xf32> to vector<16x128xbf16>
    %c0_5 = arith.constant 0 : index
    %c0_6 = arith.constant 0 : index
    %11 = vector.load %arg4[%c0_5, %c0_6] : memref<16x128xbf16, #tpu.memory_space<vmem>>, vector<16x128xbf16>
    tpu.vector_store %arg4[%c0_5, %c0_6], %10 {strides = array<i32>} : memref<16x128xbf16, #tpu.memory_space<vmem>>, vector<16x128xbf16>,
    return
  }
  func.func @transform_0(%arg0: i32) -> (i32, i32) {
    %c0_i32 = arith.constant 0 : i32
    %c0_i32_0 = arith.constant 0 : i32
    return %arg0, %c0_i32 : i32, i32
  }
  func.func @transform_1(%arg0: i32) -> (i32, i32) {
    %c0_i32 = arith.constant 0 : i32
    %c0_i32_0 = arith.constant 0 : i32
    %c0_i32_1 = arith.constant 0 : i32
    return %c0_i32, %c0_i32_0 : i32, i32
  }
  func.func @transform_2(%arg0: i32) -> (i32, i32) {
    %c0_i32 = arith.constant 0 : i32
    %c0_i32_0 = arith.constant 0 : i32
    return %arg0, %c0_i32 : i32, i32
  }
  func.func @transform_3(%arg0: i32) -> (i32, i32) {
    %c0_i32 = arith.constant 0 : i32
    %c0_i32_0 = arith.constant 0 : i32
    return %arg0, %c0_i32 : i32, i32
  }
}

</mosaic_0001>

<bundles_post_ra>
// kernel: tpu_custom_call.1
= control target key start
LH: loop header
LB: loop body
LE: loop exit
PB: predicated region body
PF: predicated region fallthrough
CT: control target
= control target key end

     0   :  { %9 = vsyncpa [#allocation3], 0  ;;  %s1238_s0 = inlined_call_operand.vmem [shape: s32[32,1], index: 0, kind: input, shape index: {}]   ;;  %s1239_s1 = inlined_call_operand.vmem [shape: f32[1,128], index: 1, kind: input, shape index: {}]   ;;  %s1240_s2 = inlined_call_operand.hbm [shape: bf16[32,128], index: 2, kind: output, shape index: {0}]   ;;  %s1241_s3 = inlined_call_operand.hbm [shape: bf16[32,128], index: 3, kind: output, shape index: {1}]  }
   0x1   :  { %11 = vsyncpa [#allocation3 + $0x1], 0 }
   0x2   :  { %12 = vsyncpa [#allocation5], 0 }
   0x3   :  { %14 = vsyncpa [#allocation5 + $0x1], 0  ;;  %s1020_s12 = smov 0   ;;  %s1022_s13 = smov 0  }
   0x4   :  { %s1024_s14 = smov 0   ;;  %s1026_s15 = smov 0  }
   0x5 LB: > { %s1041_s16 = sadd.s32 4294967295, %s987_s15   ;;  %s770_s17 = sadd.s32 4294967294, %s987_s15   ;;  %s987_s15 = sphi %s1026_s15, %s1247_s15   ;;  %s983_s14 = sphi %s1024_s14, %s1246_s14   ;;  %s979_s13 = sphi %s1022_s13, %s1245_s13   ;;  %s975_s12 = sphi %s1020_s12, %s1244_s12  }
   0x6   : > { %s1045_s18 = sadd.s32 1, %s987_s15   ;;  %s74_s19 = sadd.s32 1, %s983_s14 }
   0x7   : > { %s71_s20 = ssub.s32 %s987_s15, %s1045_s18  ;;  %p84_p0 = scmp.ne.s32.totalorder %s983_s14, %s979_s13 }
   0x8   : > { %p72_p1 = scmp.eq.s32.totalorder %s71_s20, 0  ;;  %p85_p2 = scmp.eq.s32.totalorder %s1041_s16, 1 }
   0x9   : > { %p90_p3 = scmp.ne.s32.totalorder %s979_s13, %s975_s12  ;;  %p91_p4 = scmp.eq.s32.totalorder %s770_s17, 1 }
   0xa   : > { %s1056_s21 = scalar_select %p72_p1, %s983_s14, %s74_s19  }
   0xb   : > { %p1058_p5 = por %p85_p2, %p84_p0  ;;  %p1062_p6 = por %p91_p4, %p90_p3 }
   0xc   : > { %p773_p7 = scmp.ge.s32.totalorder %s987_s15, 1  ;;  %p147_p8 = scmp.lt.s32.totalorder %s987_s15, 3 }
   0xe   : > { %p148_p9 = pnand %p773_p7, %p147_p8 }
   0xf   : > { %s776_s24 = sshll.u32 (!%p148_p9), %s1041_s16, 1  ;;  %v989_v0 = vmov (!%p148_p9), 0   ;;  %v778_v5 = vld [vmem:[%s1239_s1] ss:$0 sm:$0xff] (!%p148_p9)  ;;  %v990_v26 = vmov (!%p148_p9), 683565275  }
  0x10   : > { %151 = sbr.rel (%p148_p9) target bundleno = 289 (0x121), region = 28  ;;  %884 = vset.pattern.permute.xlu0 (!%p148_p9), %v989_v0  ;;  %p177_p10 = scmp.lt.s32.totalorder (!%p148_p9), %s776_s24, 3  ;;  %v991_v30 = vmov (!%p148_p9), 2475754826   ;;  %v992_v32 = vmov (!%p148_p9), 2131351028  }
  0x11   : > { %v993_v34 = vmov (!%p148_p9), 2102212464   ;;  %v994_v36 = vmov (!%p148_p9), 920167782   ;;  %v995_v43 = vmov (!%p148_p9), 1326507024  }
  0x12   : > { %s1143_s4 = sand.u32 (!%p148_p9), 1, %s979_s13   ;;  %s811_s6 = sshll.u32 (!%p148_p9), %s1041_s16, 7 }
  0x13   : > { %s774_s5 = sshll.u32 (!%p148_p9), %s1143_s4, 3  ;;  %s1154_s11 = scalar_lea.hbm (!%p148_p9), %s1240_s2, %s811_s6 }
  0x14   : > { %s168_s7 = scalar_lea.vmem (!%p148_p9), [#allocation2], %s774_s5  ;;  %s175_s16 = scalar_lea.vmem (!%p148_p9), [#allocation4], %s774_s5 }
  0x15   : > { %s660_s8 = sshll.u32 (!%p148_p9), %s168_s7, 4  ;;  %s676_s17 = sshll.u32 (!%p148_p9), %s175_s16, 4  ;;  %s1158_s8 = int_to_ptr.vmem [resolvable:$true] %s660_s8  ;;  %s1165_s17 = int_to_ptr.vmem [resolvable:$true] %s676_s17 }
  0x16   : > { %s893_s26 = scalar_lea.vmem (!%p148_p9), %s1158_s8, 128  ;;  %s996_s27 = smov (!%p148_p9), [#allocation2]  }
  0x17   : > { %s1249_s24 = smov (!%p177_p10, %s776_s24), 3  ;;  %p894_p11 = scmp.ne.s32.totalorder %s1158_s8, %s893_s26 }
  0x18   : > { %s777_s25 = sshll.u32 %s1249_s24, 3  ;;  %s1163_s24 = scalar_lea.hbm %s1241_s3, %s811_s6 }
  0x19   : > { %s180_s28 = scalar_lea.vmem %s1238_s0, %s777_s25  ;;  %s642_s25 = scalar_lea.sflag [#allocation3], %s1143_s4 }
  0x1a   : > { %v184_v1 = vld [vmem:[%s180_s28] sm:$0xff]  ;;  %v185_v2 = vld [vmem:[%s180_s28 + $0x8] sm:$0xff]  ;;  %p895_p12 = pnand %p894_p11, %p1058_p5  ;;  %s897_s28 = sshll.u32 %s996_s27, 4  ;;  %s898_s28 = int_to_ptr.vmem [resolvable:$false] %s897_s28 }
  0x1b   : > { %v186_v3 = vcvt.s32.f32 %v184_v1  ;;  %v187_v4 = vcvt.s32.f32 %v185_v2  ;;  %s899_s29 = scalar_lea.vmem %s898_s28, 256  ;;  %p900_p0 = scmp.lt.s32.totalorder %s1158_s8, %s898_s28 }
  0x1c   : > { %p896_p13 = pneg %p895_p12  ;;  %p901_p1 = scmp.lt.s32.totalorder %s899_s29, %s893_s26 }
  0x1d   : > { %191 = vperm.xlu0 %884, %v186_v3  }
  0x1e   : > { %p902_p2 = por %p901_p1, %p900_p0 }
  0x20   : > { %p903_p3 = pnand %p902_p2, %p896_p13 }
  0x21   : > { %196 = vperm.xlu0 %884, %v187_v4  }
  0x9c   : > { %v192_v6 = vpop.permute.xlu0 %191 }
  0x9d   : > { %v1075_v7 = vmul.f32 %v778_v5, %v192_v6 }
  0x9f   : > { %v207_v8 = vand.u32 2147483647, %v1075_v7  ;;  %v210_v9 = vand.u32 2139095040, %v1075_v7  ;;  %vm209_vm14 = vcmp.lt.s32.totalorder %v1075_v7, 0 }
  0xa0   : > { %v197_v10 = vpop.permute.xlu0 %196 }
  0xa1   : > { %v211_v11 = vshrl.u32 %v210_v9, 23  ;;  %v1079_v12 = vmul.f32 %v778_v5, %v197_v10  ;;  %v214_v13 = vand.u32 8388607, %v207_v8  ;;  %vm208_vm15 = vcmp.le.f32.partialorder %v207_v8, 0.7853982 }
  0xa3   : > { %v779_v14 = vadd.s32 4294967169, %v211_v11  ;;  %v313_v15 = vand.u32 2139095040, %v1079_v12  ;;  %v215_v17 = vor.u32 8388608, %v214_v13  ;;  %v310_v19 = vand.u32 2147483647, %v1079_v12 }
  0xa5   : > { %v217_v16 = vadd.s32 1, %v779_v14  ;;  %v314_v18 = vshrl.u32 %v313_v15, 23  ;;  %v1085_v24 = vshll.u32 %v215_v17, 8  ;;  %v317_v28 = vand.u32 8388607, %v310_v19 }
  0xa7   : > { %vm218_vm0 = vcmp.gt.s32.totalorder %v217_v16, 0  ;;  %v783_v21 = vadd.s32 4294967169, %v314_v18  ;;  %v318_v58 = vor.u32 8388608, %v317_v28 }
  0xa8   : > { %v219_v20 = vsel %vm218_vm0, %v217_v16, 0  ;;  %vm312_vm0 = vcmp.lt.s32.totalorder %v1079_v12, 0 }
  0xa9   : > { %v220_v22 = vshrl.u32 %v219_v20, 5  ;;  %v221_v23 = vand.u32 31, %v219_v20  ;;  %v320_v29 = vadd.s32 1, %v783_v21  ;;  %v358_v9 = vshll.u32 %v318_v58, 8 }
  0xab   : > { %v222_v25 = vsub.s32 32, %v221_v23  ;;  %v224_v27 = vshll.u32 %v990_v26, %v221_v23  ;;  %v227_v31 = vshll.u32 %v991_v30, %v221_v23  ;;  %v230_v33 = vshll.u32 %v992_v32, %v221_v23 }
  0xac   : > { %v233_v35 = vshll.u32 %v993_v34, %v221_v23  ;;  %v236_v37 = vshll.u32 %v994_v36, %v221_v23  ;;  %vm239_vm1 = vcmp.lt.s32.totalorder %v220_v22, 1  ;;  %vm241_vm2 = vcmp.lt.s32.totalorder %v220_v22, 3 }
  0xad   : > { %v225_v38 = vshrl.u32 %v991_v30, %v222_v25  ;;  %v228_v39 = vshrl.u32 %v992_v32, %v222_v25  ;;  %v231_v40 = vshrl.u32 %v993_v34, %v222_v25  ;;  %v223_v41 = vshrl.u32 %v990_v26, %v222_v25 }
  0xae   : > { %v234_v42 = vshrl.u32 %v994_v36, %v222_v25  ;;  %v237_v44 = vshrl.u32 %v995_v43, %v222_v25  ;;  %vm321_vm3 = vcmp.gt.s32.totalorder %v320_v29, 0  ;;  %vm242_vm4 = vcmp.lt.s32.totalorder %v220_v22, 4 }
  0xaf   : > { %v226_v45 = vor.u32 %v225_v38, %v224_v27  ;;  %v229_v46 = vor.u32 %v228_v39, %v227_v31  ;;  %v232_v47 = vor.u32 %v231_v40, %v230_v33  ;;  %v322_v50 = vsel %vm321_vm3, %v320_v29, 0 }
  0xb0   : > { %v235_v48 = vor.u32 %v234_v42, %v233_v35  ;;  %v238_v49 = vor.u32 %v237_v44, %v236_v37  ;;  %vm240_vm5 = vcmp.lt.s32.totalorder %v220_v22, 2  ;;  %v324_v61 = vand.u32 31, %v322_v50 }
  0xb1   : > { %v243_v51 = vsel %vm239_vm1, %v223_v41, %v226_v45  ;;  %v244_v52 = vsel %vm242_vm4, %v232_v47, 2102212464  ;;  %v247_v53 = vsel %vm239_vm1, %v226_v45, %v229_v46  ;;  %v251_v54 = vsel %vm239_vm1, %v229_v46, %v232_v47 }
  0xb2   : > { %v245_v55 = vsel %vm241_vm2, %v229_v46, %v244_v52  ;;  %v248_v56 = vsel %vm242_vm4, %v235_v48, 920167782  ;;  %v252_v57 = vsel %vm242_vm4, %v238_v49, 1326507024  ;;  %v323_v5 = vshrl.u32 %v322_v50, 5 }
  0xb3   : > { %v249_v59 = vsel %vm241_vm2, %v232_v47, %v248_v56  ;;  %v253_v60 = vsel %vm241_vm2, %v235_v48, %v252_v57  ;;  %v246_v62 = vsel %vm240_vm5, %v243_v51, %v245_v55  ;;  %v325_v6 = vsub.s32 32, %v324_v61 }
  0xb4   : > { %v250_v63 = vsel %vm240_vm5, %v247_v53, %v249_v59  ;;  %v254_v0 = vsel %vm240_vm5, %v251_v54, %v253_v60  ;;  %v262_v10 = vmul.u32 %v1085_v24, %v246_v62  ;;  %v327_v11 = vshll.u32 %v990_v26, %v324_v61 }
  0xb5   : > { %v1098_v1 = vmul.u32.u64.low %v1085_v24, %v254_v0  ;;  %v1099_v2 = vmul.u32.u64.high %v1085_v24, %v254_v0, %v1098_v1  ;;  %v1102_v3 = vmul.u32.u64.low %v1085_v24, %v250_v63  ;;  %v1103_v4 = vmul.u32.u64.high %v1085_v24, %v250_v63, %v1102_v3 }
  0xb6   : > { %v330_v13 = vshll.u32 %v991_v30, %v324_v61  ;;  %v333_v14 = vshll.u32 %v992_v32, %v324_v61  ;;  %v328_v15 = vshrl.u32 %v991_v30, %v325_v6  ;;  %v331_v16 = vshrl.u32 %v992_v32, %v325_v6 }
  0xb7   : > { %v334_v17 = vshrl.u32 %v993_v34, %v325_v6  ;;  %v336_v18 = vshll.u32 %v993_v34, %v324_v61  ;;  %vm264_vm6 = vc.u32 %v1099_v2, %v1102_v3  ;;  %v265_v20 = vadd.s32 1, %v1103_v4 }
  0xb8   : > { %v337_v21 = vshrl.u32 %v994_v36, %v325_v6  ;;  %v339_v22 = vshll.u32 %v994_v36, %v324_v61  ;;  %v329_v23 = vor.u32 %v328_v15, %v327_v11  ;;  %v332_v25 = vor.u32 %v331_v16, %v330_v13 }
  0xb9   : > { %v335_v27 = vor.u32 %v334_v17, %v333_v14  ;;  %v340_v28 = vshrl.u32 %v995_v43, %v325_v6  ;;  %v266_v24 = vsel %vm264_vm6, %v265_v20, %v1103_v4  ;;  %vm342_vm7 = vcmp.lt.s32.totalorder %v323_v5, 1 }
  0xba   : > { %v338_v29 = vor.u32 %v337_v21, %v336_v18  ;;  %vm345_vm8 = vcmp.lt.s32.totalorder %v323_v5, 4  ;;  %v267_v30 = vadd.s32 %v266_v24, %v262_v10  ;;  %vm344_vm9 = vcmp.lt.s32.totalorder %v323_v5, 3 }
  0xbb   : > { %v341_v31 = vor.u32 %v340_v28, %v339_v22  ;;  %v347_v32 = vsel %vm345_vm8, %v335_v27, 2102212464  ;;  %v326_v33 = vshrl.u32 %v990_v26, %v325_v6  ;;  %v350_v34 = vsel %vm342_vm7, %v329_v23, %v332_v25 }
  0xbc   : > { %v351_v35 = vsel %vm345_vm8, %v338_v29, 920167782  ;;  %v354_v37 = vsel %vm342_vm7, %v332_v25, %v335_v27  ;;  %v268_v38 = vadd.s32 536870912, %v267_v30  ;;  %vm343_vm10 = vcmp.lt.s32.totalorder %v323_v5, 2 }
  0xbd   : > { %v352_v36 = vsel %vm344_vm9, %v335_v27, %v351_v35  ;;  %v355_v39 = vsel %vm345_vm8, %v341_v31, 1326507024  ;;  %v346_v40 = vsel %vm342_vm7, %v326_v33, %v329_v23  ;;  %v348_v41 = vsel %vm344_vm9, %v332_v25, %v347_v32 }
  0xbe   : > { %v353_v42 = vsel %vm343_vm10, %v350_v34, %v352_v36  ;;  %v356_v43 = vsel %vm344_vm9, %v338_v29, %v355_v39  ;;  %v1113_v44 = vshrl.u32 %v268_v38, 30  ;;  %v349_v50 = vsel %vm343_vm10, %v346_v40, %v348_v41 }
  0xbf   : > { %v357_v45 = vsel %vm343_vm10, %v354_v37, %v356_v43  ;;  %v1115_v46 = vmul.u32.u64.low %v358_v9, %v353_v42  ;;  %v1116_v47 = vmul.u32.u64.high %v358_v9, %v353_v42, %v1115_v46  ;;  %v365_v53 = vmul.u32 %v358_v9, %v349_v50 }
  0xc0   : > { %v1118_v48 = vmul.u32.u64.low %v358_v9, %v357_v45  ;;  %v1119_v49 = vmul.u32.u64.high %v358_v9, %v357_v45, %v1118_v48  ;;  %v270_v26 = vshll.u32 %v1113_v44, 30  ;;  %v263_v1 = vadd.s32 %v1102_v3, %v1099_v2 }
  0xc1   : > { %v368_v52 = vadd.s32 1, %v1116_v47  ;;  %v293_v35 = vsub.s32 4, %v1113_v44  ;;  %vm311_vm1 = vcmp.le.f32.partialorder %v310_v19, 0.7853982 }
  0xc2   : > { %v271_v51 = vsub.s32 %v267_v30, %v270_v26  ;;  %vm367_vm11 = vc.u32 %v1119_v49, %v1115_v46  ;;  %v366_v25 = vadd.s32 %v1115_v46, %v1119_v49 }
  0xc3   : > { %v369_v55 = vsel %vm367_vm11, %v368_v52, %v1116_v47  ;;  %v294_v40 = vsel %vm209_vm14, %v293_v35, %v1113_v44 }
  0xc4   : > { %v273_v54 = vsub.s32 0, %v271_v51  ;;  %v370_v56 = vadd.s32 %v369_v55, %v365_v53  ;;  %v296_v8 = vsel %vm208_vm15, 0, %v294_v40 }
  0xc5   : > { %v516_v46 = vadd.s32 3, %v296_v8  ;;  %v300_v44 = vand.u32 3, %v296_v8 }
  0xc6   : > { %v780_v57 = vmin.u32 %v273_v54, %v271_v51  ;;  %v371_v58 = vadd.s32 536870912, %v370_v56 }
  0xc7   : > { %v517_v50 = vand.u32 3, %v516_v46  ;;  %vm302_vm2 = vcmp.eq.s32.totalorder %v300_v44, 0  ;;  %vm305_vm3 = vcmp.eq.s32.totalorder %v300_v44, 2  ;;  %vm301_vm6 = vcmp.lt.s32.totalorder %v300_v44, 2 }
  0xc8   : > { %v275_v59 = vclz %v780_v57  ;;  %v372_v60 = vshrl.u32 %v371_v58, 30 }
  0xc9   : > { %vm519_vm4 = vcmp.eq.s32.totalorder %v517_v50, 0  ;;  %vm522_vm5 = vcmp.eq.s32.totalorder %v517_v50, 2  ;;  %vm518_vm8 = vcmp.lt.s32.totalorder %v517_v50, 2 }
  0xca   : > { %v781_v61 = vadd.s32 4294967294, %v275_v59  ;;  %v373_v62 = vshll.u32 %v372_v60, 30  ;;  %v396_v39 = vsub.s32 4, %v372_v60 }
  0xcc   : > { %vm782_vm12 = vcmp.lt.s32.totalorder %v781_v61, 0  ;;  %v374_v0 = vsub.s32 %v370_v56, %v373_v62  ;;  %v397_v43 = vsel %vm312_vm0, %v396_v39, %v372_v60 }
  0xcd   : > { %v278_v63 = vsel %vm782_vm12, 0, %v781_v61  ;;  %v399_v47 = vsel %vm311_vm1, 0, %v397_v43 }
  0xce   : > { %v279_v4 = vsub.s32 32, %v278_v63  ;;  %v283_v5 = vsub.s32 4294967266, %v278_v63  ;;  %v376_v6 = vsub.s32 0, %v374_v0  ;;  %v280_v9 = vshll.u32 %v271_v51, %v278_v63 }
  0xcf   : > { %v620_v26 = vadd.s32 3, %v399_v47  ;;  %v403_v53 = vand.u32 3, %v399_v47 }
  0xd0   : > { %v281_v10 = vshrl.u32 %v263_v1, %v279_v4  ;;  %v284_v11 = vadd.s32 127, %v283_v5  ;;  %v784_v13 = vmin.u32 %v376_v6, %v374_v0 }
  0xd1   : > { %v621_v19 = vand.u32 3, %v620_v26  ;;  %vm405_vm7 = vcmp.eq.s32.totalorder %v403_v53, 0  ;;  %vm408_vm9 = vcmp.eq.s32.totalorder %v403_v53, 2  ;;  %vm404_vm12 = vcmp.lt.s32.totalorder %v403_v53, 2 }
  0xd2   : > { %v282_v14 = vor.u32 %v281_v10, %v280_v9  ;;  %v285_v15 = vshll.u32 %v284_v11, 23  ;;  %v378_v16 = vclz %v784_v13 }
  0xd3   : > { %vm623_vm10 = vcmp.eq.s32.totalorder %v621_v19, 0  ;;  %vm626_vm11 = vcmp.eq.s32.totalorder %v621_v19, 2 }
  0xd4   : > { %v286_v17 = vor.u32 4788187, %v285_v15  ;;  %v785_v18 = vadd.s32 4294967294, %v378_v16  ;;  %v289_v21 = vcvt.s32.f32 %v282_v14 }
  0xd6   : > { %v287_v20 = vand.u32 2147483647, %v286_v17  ;;  %vm786_vm13 = vcmp.lt.s32.totalorder %v785_v18, 0 }
  0xd7   : > { %v381_v23 = vsel %vm786_vm13, 0, %v785_v18  ;;  %vm622_vm13 = vcmp.lt.s32.totalorder %v621_v19, 2 }
  0xd8   : > { %v290_v22 = vmul.f32 %v289_v21, %v287_v20  ;;  %v382_v2 = vsub.s32 32, %v381_v23  ;;  %v386_v3 = vsub.s32 4294967266, %v381_v23  ;;  %v383_v28 = vshll.u32 %v374_v0, %v381_v23 }
  0xda   : > { %v291_v27 = vxor.u32 2147483648, %v290_v22  ;;  %v384_v24 = vshrl.u32 %v366_v25, %v382_v2  ;;  %v387_v29 = vadd.s32 127, %v386_v3 }
  0xdc   : > { %v292_v30 = vsel %vm209_vm14, %v291_v27, %v290_v22  ;;  %v385_v31 = vor.u32 %v384_v24, %v383_v28  ;;  %v388_v32 = vshll.u32 %v387_v29, 23  ;;  %vm299_vm14 = vweird.f32 %v1075_v7 }
  0xdd   : > { %v295_v33 = vsel %vm208_vm15, %v1075_v7, %v292_v30  ;;  %vm402_vm15 = vweird.f32 %v1079_v12 }
  0xde   : > { %v389_v34 = vor.u32 4788187, %v388_v32  ;;  %885 = vcosq.f32 %v295_v33  ;;  %v392_v38 = vcvt.s32.f32 %v385_v31 }
  0xdf   : > { %887 = vsinq.f32 %v295_v33 }
  0xe0   : > { %v390_v37 = vand.u32 2147483647, %v389_v34 }
  0xe2   : > { %v393_v36 = vmul.f32 %v392_v38, %v390_v37 }
  0xe4   : > { %v394_v41 = vxor.u32 2147483648, %v393_v36 }
  0xe6   : > { %v395_v42 = vsel %vm312_vm0, %v394_v41, %v393_v36 }
  0xe7   : > { %v398_v45 = vsel %vm311_vm1, %v1079_v12, %v395_v42 }
  0xe8   : > { %889 = vcosq.f32 %v398_v45  ;;  %v886_v48 = vpop.eup %885 }
  0xe9   : > { %891 = vsinq.f32 %v398_v45  ;;  %v888_v49 = vpop.eup %887  ;;  %v306_v52 = vxor.u32 2147483648, %v886_v48 }
  0xea   : > { %v303_v51 = vxor.u32 2147483648, %v888_v49 }
  0xeb   : > { %v307_v56 = vsel %vm305_vm3, %v306_v52, %v888_v49  ;;  %v524_v58 = vsel %vm522_vm5, %v306_v52, %v888_v49 }
  0xec   : > { %v304_v55 = vsel %vm302_vm2, %v886_v48, %v303_v51  ;;  %v521_v57 = vsel %vm519_vm4, %v886_v48, %v303_v51 }
  0xed   : > { %v308_v62 = vsel %vm301_vm6, %v304_v55, %v307_v56  ;;  %v525_v0 = vsel %vm518_vm8, %v521_v57, %v524_v58 }
  0xee   : > { %v309_v10 = vsel %vm299_vm14, nan, %v308_v62  ;;  %v526_v7 = vsel %vm299_vm14, nan, %v525_v0 }
  0xf2   : > { %v890_v54 = vpop.eup %889 }
  0xf3   : > { %v892_v59 = vpop.eup %891  ;;  %v409_v60 = vxor.u32 2147483648, %v890_v54 }
  0xf4   : > { %v406_v61 = vxor.u32 2147483648, %v892_v59 }
  0xf5   : > { %v410_v63 = vsel %vm408_vm9, %v409_v60, %v892_v59  ;;  %v628_v1 = vsel %vm626_vm11, %v409_v60, %v892_v59 }
  0xf6   : > { %v407_v4 = vsel %vm405_vm7, %v890_v54, %v406_v61  ;;  %v625_v5 = vsel %vm623_vm10, %v890_v54, %v406_v61 }
  0xf7   : > { %v411_v6 = vsel %vm404_vm12, %v407_v4, %v410_v63  ;;  %v629_v9 = vsel %vm622_vm13, %v625_v5, %v628_v1 }
  0xf8   : > { %v412_v11 = vsel %vm402_vm15, nan, %v411_v6  ;;  %v630_v12 = vsel %vm402_vm15, nan, %v629_v9 }
  0xf9   : > { %v816_v13 = vpack.c.bf16 %v412_v11, %v309_v10  ;;  %v821_v14 = vpack.c.bf16 %v630_v12, %v526_v7 }
  0xfb   : > { %817 = vst [vmem:[%s168_s7] sm:$0xff] %v816_v13   ;;  %822 = vst [vmem:[%s175_s16] sm:$0xff] %v821_v14  }
  0xfc   : > { %906 = shalt.err (!%p903_p3)
}
  0xfd   : > { %s907_s30 = scalar_lea.hbm %s1154_s11, 128  ;;  %s911_s7 = scalar_lea.hbm %s1240_s2, 256 }
  0xfe   : > { %p908_p4 = scmp.ne.s32.totalorder %s1154_s11, %s907_s30  ;;  %p912_p9 = scmp.lt.u32.totalorder %s1154_s11, %s1240_s2 }
  0xff   : > { %p913_p10 = scmp.lt.u32.totalorder %s911_s7, %s907_s30  ;;  %p915_p12 = scmp.lt.u32.totalorder %s907_s30, %s1154_s11 }
 0x100   : > { %p909_p7 = pnand %p908_p4, %p1058_p5 }
 0x101   : > { %p914_p11 = por %p913_p10, %p912_p9 }
 0x102   : > { %p910_p8 = pneg %p909_p7 }
 0x103   : > { %p916_p13 = por %p915_p12, %p914_p11 }
 0x105   : > { %p917_p0 = pnand %p916_p13, %p910_p8 }
 0x107   : > { %920 = shalt.err (!%p917_p0)
}
 0x108   : > { %s997_s16 = smov 64   ;;  %s998_s19 = smov 4  }
 0x109   : > { %831 = dma.vmem_to_hbm [thread:$0]  (%p1058_p5), %s1158_s8, 128, %s1154_s11, %s642_s25, %s997_s16, %s997_s16, %s998_s19  }
 0x10a   : > { %s647_s20 = scalar_lea.sflag [#allocation5], %s1143_s4  ;;  %s921_s26 = scalar_lea.vmem %s1165_s17, 128 }
 0x10b   : > { %p922_p1 = scmp.ne.s32.totalorder %s1165_s17, %s921_s26  ;;  %s999_s27 = smov [#allocation4]  }
 0x10c   : > { %s925_s28 = sshll.u32 %s999_s27, 4  ;;  %s926_s28 = int_to_ptr.vmem [resolvable:$false] %s925_s28 }
 0x10d   : > { %p923_p2 = pnand %p922_p1, %p1058_p5  ;;  %s927_s29 = scalar_lea.vmem %s926_s28, 256 }
 0x10e   : > { %p928_p4 = scmp.lt.s32.totalorder %s1165_s17, %s926_s28  ;;  %p929_p7 = scmp.lt.s32.totalorder %s927_s29, %s921_s26 }
 0x10f   : > { %p924_p3 = pneg %p923_p2 }
 0x110   : > { %p930_p8 = por %p929_p7, %p928_p4 }
 0x112   : > { %p931_p9 = pnand %p930_p8, %p924_p3 }
 0x114   : > { %934 = shalt.err (!%p931_p9)
}
 0x115   : > { %s935_s8 = scalar_lea.hbm %s1163_s24, 128  ;;  %s939_s30 = scalar_lea.hbm %s1241_s3, 256 }
 0x116   : > { %p936_p10 = scmp.ne.s32.totalorder %s1163_s24, %s935_s8  ;;  %p940_p13 = scmp.lt.u32.totalorder %s1163_s24, %s1241_s3 }
 0x117   : > { %p941_p0 = scmp.lt.u32.totalorder %s939_s30, %s935_s8  ;;  %p943_p2 = scmp.lt.u32.totalorder %s935_s8, %s1163_s24 }
 0x118   : > { %p937_p11 = pnand %p936_p10, %p1058_p5 }
 0x119   : > { %p942_p1 = por %p941_p0, %p940_p13 }
 0x11a   : > { %p938_p12 = pneg %p937_p11 }
 0x11b   : > { %p944_p3 = por %p943_p2, %p942_p1 }
 0x11d   : > { %p945_p4 = pnand %p944_p3, %p938_p12 }
 0x11f   : > { %948 = shalt.err (!%p945_p4)
}
 0x120   : > { %832 = dma.vmem_to_hbm [thread:$0]  (%p1058_p5), %s1165_s17, 128, %s1163_s24, %s647_s20, %s997_s16, %s997_s16, %s998_s19  }
 0x121 PF: > { %p842_p7 = scmp.ge.s32.totalorder %s987_s15, 2  ;;  %s691_s7 = sand.u32 1, %s975_s12  }
 0x122   : > { %s692_s9 = scalar_lea.sflag [#allocation3], %s691_s7 }
 0x123   : > { %p836_p8 = pnand %p842_p7, %p1062_p6 }
 0x125   : > { %966 = dma.done.wait (!%p836_p8), %s692_s9, 128  }
 0x126   : > { %968 = vsyncadd (!%p836_p8), %s692_s9, 4294967168  ;;  %s701_s22 = scalar_lea.sflag [#allocation5], %s691_s7 }
 0x127   : > { %970 = dma.done.wait (!%p836_p8), %s701_s22, 128  }
 0x128   : > { %972 = vsyncadd (!%p836_p8), %s701_s22, 4294967168  ;;  %p17_p5 = scmp.ge.s32.totalorder %s1045_s18, 4   ;;  %s1244_s12 = smov %s979_s13 }
 0x129   : > { %s1245_s13 = smov %s983_s14  ;;  %s1246_s14 = smov %s1056_s21 }
 0x12a   : > { %s1247_s15 = smov %s1045_s18  ;;  %19 = sbr.rel (!%p17_p5) target bundleno = 5 (0x5), region = 80 }
 0x131   :  { %706 = vsyncpa [#allocation3], 1 }
 0x132   :  { %708 = vsyncpa [#allocation3 + $0x1], 1 }
 0x133   :  { %709 = vsyncpa [#allocation5], 1 }
 0x134   :  { %711 = vsyncpa [#allocation5 + $0x1], 1 }

</bundles_post_ra>
